<compile_context>
chip_gen: v5e
topology: v5e:2x2
jax: 0.10.0
libtpu: 0.0.40
codegen_flags: <defaults>
</compile_context>

<pallas_src>
import jax
import jax.numpy as jnp
from jax.experimental import pallas as pl
from jax.experimental.pallas import tpu as pltpu

LANES = 128
MAX_BLOCK_ROWS = 512  # (512, 128) f32 = 256 KiB per block; in+out double-buffered ~1 MiB


def _round_up(n, m):
    return ((n + m - 1) // m) * m


def affine_kernel(p_ref, x_ref, o_ref):
    # p_ref: (2,) f32 in SMEM  -> [a_eff, b_eff]
    # x_ref/o_ref: (block_rows, 128) f32 in VMEM (lane-dense batch slab)
    o_ref[...] = x_ref[...] * p_ref[0] + p_ref[1]


def pack_params(params):
    """Fold the three affine layers into y = a_eff * x + b_eff (exact, no nonlinearity).

    PyTorch Linear: y = x @ W.T + b with W of shape (out, in).
    Composition:  a_eff = w3 @ w2 @ w1  (1x1),  b_eff = w3 @ (w2 @ b1 + b2) + b3  (1,).
    """
    w1, b1 = params["linear1"]
    w2, b2 = params["linear2"]
    w3, b3 = params["linear3"]
    a_eff = (w3 @ w2 @ w1)[0, 0]
    b_eff = (w3 @ (w2 @ b1 + b2) + b3)[0]
    return jnp.stack([a_eff, b_eff]).astype(jnp.float32)


@jax.jit
def dummy_model_forward(x, packed_params):
    """x: (B, 1) float32.  packed_params: flat f32[2] from pack_params()."""
    B = x.shape[0]

    # Lane-dense layout: flatten batch onto the 128-wide lane axis, pad rows to >= 8.
    rows_needed = max(1, -(-B // LANES))
    block_rows = min(_round_up(rows_needed, 8), MAX_BLOCK_ROWS)
    rows = _round_up(rows_needed, block_rows)
    b_pad = rows * LANES

    x_flat = jnp.pad(x.reshape(-1), (0, b_pad - B))
    x_dense = x_flat.reshape(rows, LANES).astype(jnp.float32)

    out_dense = pl.pallas_call(
        affine_kernel,
        out_shape=jax.ShapeDtypeStruct((rows, LANES), jnp.float32),
        grid=(rows // block_rows,),
        in_specs=[
            pl.BlockSpec(memory_space=pltpu.MemorySpace.SMEM),              # packed params
            pl.BlockSpec((block_rows, LANES), lambda i: (i, 0)),            # x slab
        ],
        out_specs=pl.BlockSpec((block_rows, LANES), lambda i: (i, 0)),
        compiler_params=pltpu.CompilerParams(
            dimension_semantics=("parallel",),
        ),
    )(packed_params, x_dense)

    # Undo padding and restore the (B, 1) module output shape (element order preserved).
    return out_dense.reshape(-1)[:B].reshape(B, 1)


def init_params(key):
    """Deterministic init matching PyTorch Linear shapes: weight (out, in), bias (out,)."""
    shapes = {"linear1": (2, 1), "linear2": (3, 2), "linear3": (1, 3)}
    params = {}
    for name, (out_f, in_f) in shapes.items():
        key, kw, kb = jax.random.split(key, 3)
        bound = 1.0 / (in_f ** 0.5)  # mimic torch.nn.Linear default uniform bound
        w = jax.random.uniform(kw, (out_f, in_f), jnp.float32, -bound, bound)
        b = jax.random.uniform(kb, (out_f,), jnp.float32, -bound, bound)
        params[name] = (w, b)
    return params


def reference_forward(x, params):
    h = x
    for name in ("linear1", "linear2", "linear3"):
        w, b = params[name]
        h = h @ w.T + b
    return h


if __name__ == "__main__":
    key = jax.random.PRNGKey(0)
    params = init_params(key)

    # Hoisted once: all per-layer weights fold into two scalars.
    packed = jax.block_until_ready(pack_params(params))

    # Small input consistent with the module: batch=2, in_features=1.
    x = jax.random.normal(jax.random.PRNGKey(0), (2, 1), dtype=jnp.float32)

    out = jax.block_until_ready(dummy_model_forward(x, packed))
    ref = reference_forward(x, params)

    assert out.shape == (2, 1), out.shape
    assert jnp.allclose(out, ref, atol=1e-5, rtol=1e-5), (out, ref)

    print("KERNEL_OK")
</pallas_src>

<mosaic_0001>
module attributes {stable_mosaic.version = 11 : i64} {
  func.func @affine_kernel(%arg0: i32, %arg1: memref<2xf32, #tpu.memory_space<smem>>, %arg2: memref<8x128xf32, #tpu.memory_space<vmem>>, %arg3: memref<8x128xf32, #tpu.memory_space<vmem>>) attributes {dimension_semantics = [#tpu.dimension_semantics<parallel>], iteration_bounds = array<i64: 1>, scalar_prefetch = 0 : i64, scratch_operands = 0 : i64, tpu.core_type = #tpu.core_type<tc>, window_params = [{transform_indices = @transform_0, window_bounds = array<i64: 2>}, {transform_indices = @transform_1, window_bounds = array<i64: 8, 128>}, {transform_indices = @transform_2, window_bounds = array<i64: 8, 128>}]} {
    %c0 = arith.constant 0 : index
    %c0_0 = arith.constant 0 : index
    %0 = vector.load %arg2[%c0, %c0_0] : memref<8x128xf32, #tpu.memory_space<vmem>>, vector<8x128xf32>
    %c0_1 = arith.constant 0 : index
    %1 = memref.load %arg1[%c0_1] : memref<2xf32, #tpu.memory_space<smem>>
    %2 = vector.broadcast %1 : f32 to vector<8x128xf32>
    %3 = arith.mulf %0, %2 : vector<8x128xf32>
    %c1 = arith.constant 1 : index
    %4 = memref.load %arg1[%c1] : memref<2xf32, #tpu.memory_space<smem>>
    %5 = vector.broadcast %4 : f32 to vector<8x128xf32>
    %6 = arith.addf %3, %5 : vector<8x128xf32>
    %c0_2 = arith.constant 0 : index
    %c0_3 = arith.constant 0 : index
    %7 = vector.load %arg3[%c0_2, %c0_3] : memref<8x128xf32, #tpu.memory_space<vmem>>, vector<8x128xf32>
    tpu.vector_store %arg3[%c0_2, %c0_3], %6 {strides = array<i32>} : memref<8x128xf32, #tpu.memory_space<vmem>>, vector<8x128xf32>,
    return
  }
  func.func @transform_0(%arg0: i32) -> i32 {
    %c0_i32 = arith.constant 0 : i32
    %c0_i32_0 = arith.constant 0 : i32
    return %c0_i32 : i32
  }
  func.func @transform_1(%arg0: i32) -> (i32, i32) {
    %c0_i32 = arith.constant 0 : i32
    %c0_i32_0 = arith.constant 0 : i32
    return %arg0, %c0_i32 : i32, i32
  }
  func.func @transform_2(%arg0: i32) -> (i32, i32) {
    %c0_i32 = arith.constant 0 : i32
    %c0_i32_0 = arith.constant 0 : i32
    return %arg0, %c0_i32 : i32, i32
  }
}

</mosaic_0001>

<bundles_post_ra>
// kernel: dummy_model_forward.1
= control target key start
LH: loop header
LB: loop body
LE: loop exit
PB: predicated region body
PF: predicated region fallthrough
CT: control target
= control target key end

     0   :  { %7 = vsyncpa [#allocation3], 0  ;;  %s53_s12 = smov [#allocation2]   ;;  %s78_s0 = inlined_call_operand.vmem [shape: f32[2], index: 0, kind: input, shape index: {}]   ;;  %s79_s1 = inlined_call_operand.vmem [shape: f32[8,128], index: 1, kind: input, shape index: {}]   ;;  %s80_s2 = inlined_call_operand.vmem [shape: f32[8,128], index: 2, kind: output, shape index: {}]  }
   0x1   :  { %s13_s11 = sshll.u32 %s78_s0, 4  ;;  %s14_s11 = int_to_ptr.vmem [resolvable:$true] %s13_s11 }
   0x2   :  { %16 = dma.vmem_to_smem %s14_s11, 16, %s53_s12, [#allocation3]  }
   0x3   :  { %51 = dma.done.wait [#allocation3], 16  }
   0x4   :  { %52 = vsyncadd [#allocation3], 4294967280 }
   0x5   :  { %23 = sfence }
   0x6   :  { %s25_s13 = sld [smem:[#allocation2]]  ;;  %v24_v0 = vld [vmem:[%s79_s1] sm:$0xff] }
   0x7   :  { %s37_s14 = sld [smem:[#allocation2 + $0x1]] }
   0xc   :  { %v26_v1 = vstv %s25_s13 }
   0xd   :  { %v27_v2 = vmul.f32 %v26_v1, %v24_v0  ;;  %v29_v3 = vstv %s37_s14 }
   0xf   :  { %v30_v4 = vadd.f32 %v29_v3, %v27_v2 }
  0x11   :  { %31 = vst [vmem:[%s80_s2] sm:$0xff] %v30_v4 }
  0x12   :  { %36 = vsyncpa [#allocation3], 1 }

</bundles_post_ra>
